<compile_context>
chip_gen: v7x
topology: tpu7x:2x2x1
jax: 0.10.0
libtpu: 0.0.40
codegen_flags: <defaults>
</compile_context>

<pallas_src>
import functools

import jax
import jax.numpy as jnp
from jax import lax
from jax.experimental import pallas as pl
from jax.experimental.pallas import tpu as pltpu

# ---------------- module hyper-parameters (defaults) --------------------------
ALPHA = 0.25
GAMMA = 2.0                      # q*q fast path only used when GAMMA == 2.0
FOCAL_WEIGHT = 1.0
BCE_WEIGHT = 1.0
WBCBCE_WEIGHT = 1.0
_TOT_W = FOCAL_WEIGHT + BCE_WEIGHT + WBCBCE_WEIGHT
FOCAL_W = FOCAL_WEIGHT / _TOT_W
BCE_W = BCE_WEIGHT / _TOT_W
WBCBCE_W = WBCBCE_WEIGHT / _TOT_W
ADAPTIVELY_RESCALE = True
_EPS = 1e-6

_PAD_LOGIT = -80.0                       # bce(-80, 0) ~ 1.8e-35 -> padding is ~0
_TARGET_BLOCK_BYTES = 2 * 1024 * 1024    # ~2 MiB DMA blocks (HBM efficiency)
_TARGET_CHUNK_ELEMS = 512 * 128          # compute sub-chunk (bounds VMEM temps)


def _round_up(x, m):
    return -(-x // m) * m


def _sublane_mult(*dtypes):
    m = 8
    for dt in dtypes:
        m = max(m, {4: 8, 2: 16, 1: 32}.get(jnp.dtype(dt).itemsize, 8))
    return m


# ------------------------------- kernel ---------------------------------------
def _partial_sums_kernel(x_ref, t_ref, bce_ref, bcep_ref, pos_ref, foc_ref,
                         *, n_sub, sub_groups):
    """Accumulates per-(sublane, lane) partial sums of bce, bce*t, t, focal.

    x_ref / t_ref : (groups_per_tile, s8, lanes) input blocks (any float dtype)
    *_ref outputs : (s8, lanes) float32 accumulators (resident across steps)
    """
    step = pl.program_id(1)          # reduction axis: last grid dim, "arbitrary"

    @pl.when(step == 0)
    def _():
        bce_ref[...] = jnp.zeros_like(bce_ref)
        bcep_ref[...] = jnp.zeros_like(bcep_ref)
        pos_ref[...] = jnp.zeros_like(pos_ref)
        foc_ref[...] = jnp.zeros_like(foc_ref)

    def chunk(c, carry):
        g0 = pl.multiple_of(c * sub_groups, sub_groups)
        x = x_ref[pl.ds(g0, sub_groups)].astype(jnp.float32)
        t = t_ref[pl.ds(g0, sub_groups)].astype(jnp.float32)

        # Numerically stable BCE-with-logits (reduction='none'):
        #   bce = max(x, 0) - x*t + log1p(exp(-|x|))
        z = jnp.exp(-jnp.abs(x))
        bce = jnp.maximum(x, 0.0) - x * t + jnp.log1p(z)
        # pt = exp(-bce): exact for hard and soft targets; single EUP op instead
        # of the reciprocal/select chain (VPU slots are the scarce resource).
        pt = jnp.exp(-bce)
        q = 1.0 - pt
        mod = q * q if GAMMA == 2.0 else q ** GAMMA
        focal = (ALPHA * mod) * bce

        # Leading-axis sums -> pure vreg adds (no cross-sublane XLU reduce).
        bce_ref[...] += jnp.sum(bce, axis=0)
        bcep_ref[...] += jnp.sum(bce * t, axis=0)
        pos_ref[...] += jnp.sum(t, axis=0)
        foc_ref[...] += jnp.sum(focal, axis=0)
        return carry

    lax.fori_loop(0, n_sub, chunk, 0)


# ------------------------------ tiling ----------------------------------------
def _geometry(batch, classes, x_dtype, t_dtype):
    """Static packing / tiling decisions (all Python ints)."""
    # Lane-dense packing: pad classes to cp, fold `pack` batch rows into lanes.
    if classes <= 128:
        cp = pl.next_power_of_2(classes)
        pack = 128 // cp
        lanes = 128
    else:
        cp = _round_up(classes, 128)
        pack = 1
        lanes = cp

    s8 = _sublane_mult(x_dtype, t_dtype)                   # native sublane tile
    itemsize = max(jnp.dtype(x_dtype).itemsize, jnp.dtype(t_dtype).itemsize)

    rows = _round_up(batch, pack) // pack                   # packed rows

    # Compute sub-chunk (bounds per-iteration temporaries to ~256 KiB each).
    sub_rows = max(s8, min(512, _TARGET_CHUNK_ELEMS // lanes // s8 * s8))

    # DMA block: ~2 MiB per input in the actual input dtype.
    target_rows = max(s8, _TARGET_BLOCK_BYTES // (lanes * itemsize))
    row_tile = min(target_rows, _round_up(rows, s8))
    if row_tile >= sub_rows:
        row_tile = row_tile // sub_rows * sub_rows          # multiple of chunk
    else:
        row_tile = max(s8, row_tile // s8 * s8)
        sub_rows = row_tile
    n_sub = row_tile // sub_rows

    steps = _round_up(rows, row_tile) // row_tile
    shards = 2 if steps >= 2 else 1                         # both v7x TensorCores
    steps = _round_up(steps, shards)
    return dict(cp=cp, pack=pack, lanes=lanes, s8=s8, row_tile=row_tile,
                sub_rows=sub_rows, n_sub=n_sub, steps=steps, shards=shards)


# ------------------------------ wrapper ---------------------------------------
@jax.jit
def focal_bce_wbcbce_loss(output, target):
    """Forward pass of Focal_BCE_WBCBCE_Loss; returns a scalar float32 loss."""
    batch, classes = output.shape
    g = _geometry(batch, classes, output.dtype, target.dtype)
    cp, pack, lanes, s8 = g["cp"], g["pack"], g["lanes"], g["s8"]
    row_tile, sub_rows, n_sub = g["row_tile"], g["sub_rows"], g["n_sub"]
    steps, shards = g["steps"], g["shards"]
    steps_per_shard = steps // shards

    rows_padded = steps * row_tile
    batch_padded = rows_padded * pack

    x, t = output, target
    if cp != classes:                                       # lane-dense class pad
        x = jnp.pad(x, ((0, 0), (0, cp - classes)), constant_values=_PAD_LOGIT)
        t = jnp.pad(t, ((0, 0), (0, cp - classes)))
    if batch_padded != batch:                               # pack / tile row pad
        x = jnp.pad(x, ((0, batch_padded - batch), (0, 0)),
                    constant_values=_PAD_LOGIT)
        t = jnp.pad(t, ((0, batch_padded - batch), (0, 0)))
    # Free row-major reshape: (B_pad, Cp) -> (rows_pad/s8, s8, pack*Cp).
    x = x.reshape(rows_padded // s8, s8, lanes)
    t = t.reshape(rows_padded // s8, s8, lanes)

    groups_per_tile = row_tile // s8
    in_spec = pl.BlockSpec((groups_per_tile, s8, lanes),
                           lambda s, i: (s * steps_per_shard + i, 0, 0))
    out_spec = pl.BlockSpec((None, s8, lanes), lambda s, i: (s, 0, 0))
    part = jax.ShapeDtypeStruct((shards, s8, lanes), jnp.float32)

    n_el = rows_padded * lanes
    cost = pl.CostEstimate(
        flops=20 * n_el,
        transcendentals=3 * n_el,
        bytes_accessed=n_el * (jnp.dtype(x.dtype).itemsize
                               + jnp.dtype(t.dtype).itemsize)
                       + 4 * shards * s8 * lanes * 4)

    kernel = functools.partial(_partial_sums_kernel,
                               n_sub=n_sub, sub_groups=sub_rows // s8)

    p_bce, p_bcep, p_pos, p_foc = pl.pallas_call(
        kernel,
        out_shape=(part, part, part, part),
        grid=(shards, steps_per_shard),
        in_specs=[in_spec, in_spec],
        out_specs=(out_spec, out_spec, out_spec, out_spec),
        compiler_params=pltpu.CompilerParams(
            dimension_semantics=("parallel", "arbitrary"),
            vmem_limit_bytes=32 * 1024 * 1024),
        cost_estimate=cost,
    )(x, t)

    # ---- tiny finalize in plain JAX (per-class stats, wbcbce, rescale) -------
    def per_class(p):                         # (shards, s8, lanes) -> (classes,)
        col = jnp.sum(p, axis=(0, 1))                       # (lanes,)
        return jnp.sum(col.reshape(pack, cp)[:, :classes], axis=0)

    sum_bce, sum_bcep, sum_pos, sum_foc = map(
        per_class, (p_bce, p_bcep, p_pos, p_foc))

    n = float(batch * classes)
    loss_bce = jnp.sum(sum_bce) / n                         # nn.BCEWithLogitsLoss
    loss_focal = jnp.sum(sum_foc) / n                       # FocalLoss (mean)
    pos_loss = sum_bcep / (sum_pos + _EPS)
    neg_loss = (sum_bce - sum_bcep) / ((batch - sum_pos) + _EPS)
    loss_wbcbce = 0.5 * jnp.mean(pos_loss + neg_loss)       # WeightedByClassBCE

    if ADAPTIVELY_RESCALE:
        # Mirrors the module's .detach().item() scalar glue, device-side.
        l1 = lax.stop_gradient(loss_focal)
        l2 = lax.stop_gradient(loss_bce)
        l3 = lax.stop_gradient(loss_wbcbce)
        tot = l1 + l2 + l3
        w1 = tot / (l1 + _EPS) * FOCAL_W
        w2 = tot / (l2 + _EPS) * BCE_W
        w3 = tot / (l3 + _EPS) * WBCBCE_W
    else:
        w1, w2, w3 = FOCAL_W, BCE_W, WBCBCE_W
    return w1 * loss_focal + w2 * loss_bce + w3 * loss_wbcbce


# ------------------------------ reference -------------------------------------
def _reference(output, target):
    """Pure-JAX reference of the same forward pass (sanity check)."""
    x = output.astype(jnp.float32)
    t = target.astype(jnp.float32)
    bce = jnp.maximum(x, 0.0) - x * t + jnp.log1p(jnp.exp(-jnp.abs(x)))
    loss2 = jnp.mean(bce)
    pt = jnp.exp(-bce)
    loss1 = jnp.mean(ALPHA * (1.0 - pt) ** GAMMA * bce)
    pc = jnp.sum(t, axis=0)
    nc = jnp.sum(1.0 - t, axis=0)
    pos = jnp.sum(bce * t, axis=0) / (pc + _EPS)
    neg = jnp.sum(bce * (1.0 - t), axis=0) / (nc + _EPS)
    loss3 = 0.5 * jnp.mean(pos + neg)
    if ADAPTIVELY_RESCALE:
        tot = loss1 + loss2 + loss3
        w1 = tot / (loss1 + _EPS) * FOCAL_W
        w2 = tot / (loss2 + _EPS) * BCE_W
        w3 = tot / (loss3 + _EPS) * WBCBCE_W
    else:
        w1, w2, w3 = FOCAL_W, BCE_W, WBCBCE_W
    return w1 * loss1 + w2 * loss2 + w3 * loss3


if __name__ == "__main__":
    key = jax.random.PRNGKey(0)
    cases = [
        ((64, 16), jnp.float32),     # pow2 classes: lane-packed (pack=8), 1 step
        ((64, 24), jnp.float32),     # non-pow2 classes: pad 24->32, pack=4
        ((8192, 256), jnp.float32),  # classes > 128: multi-step + 2-way core shard
        ((1024, 40), jnp.bfloat16),  # bf16 inputs: dtype-aware tiling, pack=2
    ]
    for (B, C), dt in cases:
        key, k1, k2 = jax.random.split(key, 3)
        logits = jax.random.normal(k1, (B, C), dtype=jnp.float32).astype(dt)
        targets = jax.random.bernoulli(k2, p=0.3, shape=(B, C)).astype(dt)

        loss = focal_bce_wbcbce_loss(logits, targets)
        jax.block_until_ready(loss)
        ref = _reference(logits, targets)
        assert jnp.allclose(loss, ref, rtol=5e-4, atol=5e-4), \
            (B, C, str(dt), float(loss), float(ref))
    print("KERNEL_OK")
</pallas_src>

<mosaic_0001>
module attributes {stable_mosaic.version = 11 : i64} {
  func.func @_partial_sums_kernel(%arg0: i32, %arg1: i32, %arg2: memref<1x8x128xf32, #tpu.memory_space<vmem>>, %arg3: memref<1x8x128xf32, #tpu.memory_space<vmem>>, %arg4: memref<1x8x128xf32, #tpu.memory_space<vmem>>, %arg5: memref<1x8x128xf32, #tpu.memory_space<vmem>>, %arg6: memref<1x8x128xf32, #tpu.memory_space<vmem>>, %arg7: memref<1x8x128xf32, #tpu.memory_space<vmem>>) attributes {dimension_semantics = [#tpu.dimension_semantics<parallel>, #tpu.dimension_semantics<arbitrary>], iteration_bounds = array<i64: 1, 1>, scalar_prefetch = 0 : i64, scratch_operands = 0 : i64, tpu.core_type = #tpu.core_type<tc>, window_params = [{transform_indices = @transform_0, window_bounds = array<i64: 1, 8, 128>}, {transform_indices = @transform_1, window_bounds = array<i64: 1, 8, 128>}, {transform_indices = @transform_2, window_bounds = array<i64: 1, 8, 128>}, {transform_indices = @transform_3, window_bounds = array<i64: 1, 8, 128>}, {transform_indices = @transform_4, window_bounds = array<i64: 1, 8, 128>}, {transform_indices = @transform_5, window_bounds = array<i64: 1, 8, 128>}]} {
    %c0_i32 = arith.constant 0 : i32
    %0 = arith.cmpi eq, %arg1, %c0_i32 : i32
    %1 = arith.extui %0 : i1 to i32
    %c0_i32_0 = arith.constant 0 : i32
    %2 = arith.cmpi ne, %1, %c0_i32_0 : i32
    scf.if %2 {
      %cst_38 = arith.constant 0.000000e+00 : f32
      %57 = vector.broadcast %cst_38 : f32 to vector<8x128xf32>
      %c0_39 = arith.constant 0 : index
      %c0_40 = arith.constant 0 : index
      %c0_41 = arith.constant 0 : index
      %58 = vector.load %arg4[%c0_39, %c0_40, %c0_41] : memref<1x8x128xf32, #tpu.memory_space<vmem>>, vector<1x8x128xf32>
      %59 = vector.shape_cast %58 : vector<1x8x128xf32> to vector<8x128xf32>
      %60 = vector.shape_cast %57 : vector<8x128xf32> to vector<1x8x128xf32>
      tpu.vector_store %arg4[%c0_39, %c0_40, %c0_41], %60 {strides = array<i32>} : memref<1x8x128xf32, #tpu.memory_space<vmem>>, vector<1x8x128xf32>,
      %cst_42 = arith.constant 0.000000e+00 : f32
      %61 = vector.broadcast %cst_42 : f32 to vector<8x128xf32>
      %c0_43 = arith.constant 0 : index
      %c0_44 = arith.constant 0 : index
      %c0_45 = arith.constant 0 : index
      %62 = vector.load %arg5[%c0_43, %c0_44, %c0_45] : memref<1x8x128xf32, #tpu.memory_space<vmem>>, vector<1x8x128xf32>
      %63 = vector.shape_cast %62 : vector<1x8x128xf32> to vector<8x128xf32>
      %64 = vector.shape_cast %61 : vector<8x128xf32> to vector<1x8x128xf32>
      tpu.vector_store %arg5[%c0_43, %c0_44, %c0_45], %64 {strides = array<i32>} : memref<1x8x128xf32, #tpu.memory_space<vmem>>, vector<1x8x128xf32>,
      %cst_46 = arith.constant 0.000000e+00 : f32
      %65 = vector.broadcast %cst_46 : f32 to vector<8x128xf32>
      %c0_47 = arith.constant 0 : index
      %c0_48 = arith.constant 0 : index
      %c0_49 = arith.constant 0 : index
      %66 = vector.load %arg6[%c0_47, %c0_48, %c0_49] : memref<1x8x128xf32, #tpu.memory_space<vmem>>, vector<1x8x128xf32>
      %67 = vector.shape_cast %66 : vector<1x8x128xf32> to vector<8x128xf32>
      %68 = vector.shape_cast %65 : vector<8x128xf32> to vector<1x8x128xf32>
      tpu.vector_store %arg6[%c0_47, %c0_48, %c0_49], %68 {strides = array<i32>} : memref<1x8x128xf32, #tpu.memory_space<vmem>>, vector<1x8x128xf32>,
      %cst_50 = arith.constant 0.000000e+00 : f32
      %69 = vector.broadcast %cst_50 : f32 to vector<8x128xf32>
      %c0_51 = arith.constant 0 : index
      %c0_52 = arith.constant 0 : index
      %c0_53 = arith.constant 0 : index
      %70 = vector.load %arg7[%c0_51, %c0_52, %c0_53] : memref<1x8x128xf32, #tpu.memory_space<vmem>>, vector<1x8x128xf32>
      %71 = vector.shape_cast %70 : vector<1x8x128xf32> to vector<8x128xf32>
      %72 = vector.shape_cast %69 : vector<8x128xf32> to vector<1x8x128xf32>
      tpu.vector_store %arg7[%c0_51, %c0_52, %c0_53], %72 {strides = array<i32>} : memref<1x8x128xf32, #tpu.memory_space<vmem>>, vector<1x8x128xf32>,
    } else {
    }
    %c0_i32_1 = arith.constant 0 : i32
    %c1_i32 = arith.constant 1 : i32
    %3 = arith.muli %c0_i32_1, %c1_i32 : i32
    %4 = tpu.assume_multiple %3, 1 : i32
    %5 = arith.index_cast %4 : i32 to index
    %c0 = arith.constant 0 : index
    %c0_2 = arith.constant 0 : index
    %6 = vector.load %arg2[%5, %c0, %c0_2] : memref<1x8x128xf32, #tpu.memory_space<vmem>>, vector<1x8x128xf32>
    %7 = arith.index_cast %4 : i32 to index
    %c0_3 = arith.constant 0 : index
    %c0_4 = arith.constant 0 : index
    %8 = vector.load %arg3[%7, %c0_3, %c0_4] : memref<1x8x128xf32, #tpu.memory_space<vmem>>, vector<1x8x128xf32>
    %9 = math.absf %6 : vector<1x8x128xf32>
    %cst = arith.constant 0.000000e+00 : f32
    %10 = vector.broadcast %cst : f32 to vector<1x8x128xf32>
    %11 = arith.subf %10, %9 : vector<1x8x128xf32>
    %12 = math.exp %11 : vector<1x8x128xf32>
    %cst_5 = arith.constant 0.000000e+00 : f32
    %13 = vector.broadcast %cst_5 : f32 to vector<1x8x128xf32>
    %14 = arith.maximumf %6, %13 : vector<1x8x128xf32>
    %15 = arith.mulf %6, %8 : vector<1x8x128xf32>
    %16 = arith.subf %14, %15 : vector<1x8x128xf32>
    %17 = math.log1p %12 : vector<1x8x128xf32>
    %18 = arith.addf %16, %17 : vector<1x8x128xf32>
    %cst_6 = arith.constant 0.000000e+00 : f32
    %19 = vector.broadcast %cst_6 : f32 to vector<1x8x128xf32>
    %20 = arith.subf %19, %18 : vector<1x8x128xf32>
    %21 = math.exp %20 : vector<1x8x128xf32>
    %cst_7 = arith.constant 1.000000e+00 : f32
    %22 = vector.broadcast %cst_7 : f32 to vector<1x8x128xf32>
    %23 = arith.subf %22, %21 : vector<1x8x128xf32>
    %24 = arith.mulf %23, %23 : vector<1x8x128xf32>
    %cst_8 = arith.constant 2.500000e-01 : f32
    %25 = vector.broadcast %cst_8 : f32 to vector<1x8x128xf32>
    %26 = arith.mulf %25, %24 : vector<1x8x128xf32>
    %27 = arith.mulf %26, %18 : vector<1x8x128xf32>
    %c0_9 = arith.constant 0 : index
    %c0_10 = arith.constant 0 : index
    %c0_11 = arith.constant 0 : index
    %28 = vector.load %arg4[%c0_9, %c0_10, %c0_11] : memref<1x8x128xf32, #tpu.memory_space<vmem>>, vector<1x8x128xf32>
    %29 = vector.shape_cast %28 : vector<1x8x128xf32> to vector<8x128xf32>
    %cst_12 = arith.constant dense<0.000000e+00> : vector<8x128xf32>
    %30 = vector.multi_reduction <add>, %18, %cst_12 [0] : vector<1x8x128xf32> to vector<8x128xf32>
    %31 = arith.addf %29, %30 : vector<8x128xf32>
    %c0_13 = arith.constant 0 : index
    %c0_14 = arith.constant 0 : index
    %c0_15 = arith.constant 0 : index
    %32 = vector.load %arg4[%c0_13, %c0_14, %c0_15] : memref<1x8x128xf32, #tpu.memory_space<vmem>>, vector<1x8x128xf32>
    %33 = vector.shape_cast %32 : vector<1x8x128xf32> to vector<8x128xf32>
    %34 = vector.shape_cast %31 : vector<8x128xf32> to vector<1x8x128xf32>
    tpu.vector_store %arg4[%c0_13, %c0_14, %c0_15], %34 {strides = array<i32>} : memref<1x8x128xf32, #tpu.memory_space<vmem>>, vector<1x8x128xf32>,
    %c0_16 = arith.constant 0 : index
    %c0_17 = arith.constant 0 : index
    %c0_18 = arith.constant 0 : index
    %35 = vector.load %arg5[%c0_16, %c0_17, %c0_18] : memref<1x8x128xf32, #tpu.memory_space<vmem>>, vector<1x8x128xf32>
    %36 = vector.shape_cast %35 : vector<1x8x128xf32> to vector<8x128xf32>
    %37 = arith.mulf %18, %8 : vector<1x8x128xf32>
    %cst_19 = arith.constant dense<0.000000e+00> : vector<8x128xf32>
    %38 = vector.multi_reduction <add>, %37, %cst_19 [0] : vector<1x8x128xf32> to vector<8x128xf32>
    %39 = arith.addf %36, %38 : vector<8x128xf32>
    %c0_20 = arith.constant 0 : index
    %c0_21 = arith.constant 0 : index
    %c0_22 = arith.constant 0 : index
    %40 = vector.load %arg5[%c0_20, %c0_21, %c0_22] : memref<1x8x128xf32, #tpu.memory_space<vmem>>, vector<1x8x128xf32>
    %41 = vector.shape_cast %40 : vector<1x8x128xf32> to vector<8x128xf32>
    %42 = vector.shape_cast %39 : vector<8x128xf32> to vector<1x8x128xf32>
    tpu.vector_store %arg5[%c0_20, %c0_21, %c0_22], %42 {strides = array<i32>} : memref<1x8x128xf32, #tpu.memory_space<vmem>>, vector<1x8x128xf32>,
    %c0_23 = arith.constant 0 : index
    %c0_24 = arith.constant 0 : index
    %c0_25 = arith.constant 0 : index
    %43 = vector.load %arg6[%c0_23, %c0_24, %c0_25] : memref<1x8x128xf32, #tpu.memory_space<vmem>>, vector<1x8x128xf32>
    %44 = vector.shape_cast %43 : vector<1x8x128xf32> to vector<8x128xf32>
    %cst_26 = arith.constant dense<0.000000e+00> : vector<8x128xf32>
    %45 = vector.multi_reduction <add>, %8, %cst_26 [0] : vector<1x8x128xf32> to vector<8x128xf32>
    %46 = arith.addf %44, %45 : vector<8x128xf32>
    %c0_27 = arith.constant 0 : index
    %c0_28 = arith.constant 0 : index
    %c0_29 = arith.constant 0 : index
    %47 = vector.load %arg6[%c0_27, %c0_28, %c0_29] : memref<1x8x128xf32, #tpu.memory_space<vmem>>, vector<1x8x128xf32>
    %48 = vector.shape_cast %47 : vector<1x8x128xf32> to vector<8x128xf32>
    %49 = vector.shape_cast %46 : vector<8x128xf32> to vector<1x8x128xf32>
    tpu.vector_store %arg6[%c0_27, %c0_28, %c0_29], %49 {strides = array<i32>} : memref<1x8x128xf32, #tpu.memory_space<vmem>>, vector<1x8x128xf32>,
    %c0_30 = arith.constant 0 : index
    %c0_31 = arith.constant 0 : index
    %c0_32 = arith.constant 0 : index
    %50 = vector.load %arg7[%c0_30, %c0_31, %c0_32] : memref<1x8x128xf32, #tpu.memory_space<vmem>>, vector<1x8x128xf32>
    %51 = vector.shape_cast %50 : vector<1x8x128xf32> to vector<8x128xf32>
    %cst_33 = arith.constant dense<0.000000e+00> : vector<8x128xf32>
    %52 = vector.multi_reduction <add>, %27, %cst_33 [0] : vector<1x8x128xf32> to vector<8x128xf32>
    %53 = arith.addf %51, %52 : vector<8x128xf32>
    %c0_34 = arith.constant 0 : index
    %c0_35 = arith.constant 0 : index
    %c0_36 = arith.constant 0 : index
    %54 = vector.load %arg7[%c0_34, %c0_35, %c0_36] : memref<1x8x128xf32, #tpu.memory_space<vmem>>, vector<1x8x128xf32>
    %55 = vector.shape_cast %54 : vector<1x8x128xf32> to vector<8x128xf32>
    %56 = vector.shape_cast %53 : vector<8x128xf32> to vector<1x8x128xf32>
    tpu.vector_store %arg7[%c0_34, %c0_35, %c0_36], %56 {strides = array<i32>} : memref<1x8x128xf32, #tpu.memory_space<vmem>>, vector<1x8x128xf32>,
    %c1_i32_37 = arith.constant 1 : i32
    return
  }
  func.func @transform_0(%arg0: i32, %arg1: i32) -> (i32, i32, i32) {
    %c1_i32 = arith.constant 1 : i32
    %0 = arith.muli %arg0, %c1_i32 : i32
    %1 = arith.addi %0, %arg1 : i32
    %c0_i32 = arith.constant 0 : i32
    %c0_i32_0 = arith.constant 0 : i32
    %c0_i32_1 = arith.constant 0 : i32
    return %1, %c0_i32, %c0_i32_0 : i32, i32, i32
  }
  func.func @transform_1(%arg0: i32, %arg1: i32) -> (i32, i32, i32) {
    %c1_i32 = arith.constant 1 : i32
    %0 = arith.muli %arg0, %c1_i32 : i32
    %1 = arith.addi %0, %arg1 : i32
    %c0_i32 = arith.constant 0 : i32
    %c0_i32_0 = arith.constant 0 : i32
    %c0_i32_1 = arith.constant 0 : i32
    return %1, %c0_i32, %c0_i32_0 : i32, i32, i32
  }
  func.func @transform_2(%arg0: i32, %arg1: i32) -> (i32, i32, i32) {
    %c0_i32 = arith.constant 0 : i32
    %c0_i32_0 = arith.constant 0 : i32
    %c0_i32_1 = arith.constant 0 : i32
    return %arg0, %c0_i32, %c0_i32_0 : i32, i32, i32
  }
  func.func @transform_3(%arg0: i32, %arg1: i32) -> (i32, i32, i32) {
    %c0_i32 = arith.constant 0 : i32
    %c0_i32_0 = arith.constant 0 : i32
    %c0_i32_1 = arith.constant 0 : i32
    return %arg0, %c0_i32, %c0_i32_0 : i32, i32, i32
  }
  func.func @transform_4(%arg0: i32, %arg1: i32) -> (i32, i32, i32) {
    %c0_i32 = arith.constant 0 : i32
    %c0_i32_0 = arith.constant 0 : i32
    %c0_i32_1 = arith.constant 0 : i32
    return %arg0, %c0_i32, %c0_i32_0 : i32, i32, i32
  }
  func.func @transform_5(%arg0: i32, %arg1: i32) -> (i32, i32, i32) {
    %c0_i32 = arith.constant 0 : i32
    %c0_i32_0 = arith.constant 0 : i32
    %c0_i32_1 = arith.constant 0 : i32
    return %arg0, %c0_i32, %c0_i32_0 : i32, i32, i32
  }
}

</mosaic_0001>

<bundles_post_ra>
// kernel: focal_bce_wbcbce_loss.1
= control target key start
LH: loop header
LB: loop body
LE: loop exit
PB: predicated region body
PF: predicated region fallthrough
CT: control target
= control target key end

     0   :  { %s186_s0 = inlined_call_operand.vmem [shape: f32[1,8,128], index: 0, kind: input, shape index: {}]   ;;  %s187_s1 = inlined_call_operand.vmem [shape: f32[1,8,128], index: 1, kind: input, shape index: {}]   ;;  %s188_s4 = inlined_call_operand.vmem [shape: f32[1,8,128], index: 4, kind: output, shape index: {2}]   ;;  %s189_s2 = inlined_call_operand.vmem [shape: f32[1,8,128], index: 2, kind: output, shape index: {0}]   ;;  %s190_s3 = inlined_call_operand.vmem [shape: f32[1,8,128], index: 3, kind: output, shape index: {1}]   ;;  %s191_s5 = inlined_call_operand.vmem [shape: f32[1,8,128], index: 5, kind: output, shape index: {3}]  }
   0x1   :  { %v59_v0 = vld [vmem:[%s186_s0] sm:$0xff] }
   0x2   :  { %v61_v1 = vld [vmem:[%s187_s1] sm:$0xff]  ;;  %v62_v2 = vand.u32 2147483647, %v59_v0  ;;  %v66_v9 = vmax.f32 %v59_v0, 0.0 }
   0x3   :  { %98 = vst [vmem:[%s188_s4] sm:$0xff] %v61_v1  ;;  %v67_v10 = vmul.f32 %v61_v1, %v59_v0 }
   0x4   :  { %v63_v3 = vsub.f32 0.0, %v62_v2 }
   0x5   :  { %v68_v14 = vsub.f32 %v66_v9, %v67_v10 }
   0x6   :  { %v64_v4 = vmul.f32 1.442695, %v63_v3 }
   0x8   :  { %132 = vpow2.f32 %v64_v4 }
  0x12   :  { %v133_v5 = vpop.eup %132 }
  0x13   :  { %v69_v6 = vadd.f32 1.0, %v133_v5  ;;  %v72_v7 = vmul.f32 -0.5, %v133_v5  ;;  %v75_v11 = vand.u32 2147483647, %v133_v5 }
  0x15   :  { %134 = vlog2.f32 %v69_v6  ;;  %v73_v8 = vadd.f32 1.0, %v72_v7  ;;  %vm76_vm0 = vcmp.lt.f32.partialorder %v75_v11, 0.0004427343 }
  0x17   :  { %v74_v12 = vmul.f32 %v133_v5, %v73_v8 }
  0x1f   :  { %v135_v13 = vpop.eup %134 }
  0x20   :  { %v71_v15 = vmul.f32 0.6931472, %v135_v13 }
  0x22   :  { %v77_v16 = vsel %vm76_vm0, %v74_v12, %v71_v15 }
  0x23   :  { %v78_v17 = vadd.f32 %v77_v16, %v68_v14 }
  0x25   :  { %v91_v18 = vmul.f32 %v78_v17, %v61_v1  ;;  %v79_v19 = vsub.f32 0.0, %v78_v17  ;;  %89 = vst [vmem:[%s189_s2] sm:$0xff] %v78_v17 }
  0x27   :  { %v80_v20 = vmul.f32 1.442695, %v79_v19  ;;  %94 = vst [vmem:[%s190_s3] sm:$0xff] %v91_v18 }
  0x29   :  { %136 = vpow2.f32 %v80_v20 }
  0x33   :  { %v137_v21 = vpop.eup %136 }
  0x34   :  { %v82_v22 = vsub.f32 1.0, %v137_v21 }
  0x36   :  { %v83_v23 = vmul.f32 %v82_v22, %v82_v22 }
  0x38   :  { %v84_v24 = vmul.f32 0.25, %v83_v23 }
  0x3a   :  { %v85_v25 = vmul.f32 %v84_v24, %v78_v17 }
  0x3c   :  { %102 = vst [vmem:[%s191_s5] sm:$0xff] %v85_v25 }

</bundles_post_ra>
